<compile_context>
chip_gen: v7x
topology: tpu7x:2x2x1
jax: 0.10.0
libtpu: 0.0.40
codegen_flags: <defaults>
</compile_context>

<pallas_src>
import functools

import jax
import jax.numpy as jnp
from jax.experimental import pallas as pl
from jax.experimental.pallas import tpu as pltpu

LANE = 128      # vreg lane width
SUBLANE = 8     # f32 sublanes per vreg


def _round_up(n, m):
    return ((n + m - 1) // m) * m


def mlp_kernel(x_ref, p_ref, o_ref, *, f_pad, h_pad, c_pad):
    """Fused (x @ W1 + b1) -> ReLU -> (h @ W2 + b2) on one batch tile.

    p_ref is the packed parameter buffer, laid out row-wise as:
        [0           : f_pad          ]  w1   (f_pad, h_pad)
        [f_pad       : f_pad+8        ]  b1 in row 0
        [f_pad+8     : f_pad+8+h_pad  ]  w2   (h_pad, c_pad)
        [f_pad+8+h_pad : +8           ]  b2 in row 0
    All slice offsets are static multiples of 8 -> aligned VMEM views.
    """
    b1_off = f_pad
    w2_off = f_pad + SUBLANE
    b2_off = w2_off + h_pad

    x = x_ref[...]                                        # (TB, f_pad)
    w1 = p_ref[0:f_pad, 0:h_pad]                          # (f_pad, h_pad)
    b1 = p_ref[b1_off:b1_off + 1, 0:h_pad]                # (1, h_pad)
    w2 = p_ref[w2_off:w2_off + h_pad, 0:c_pad]            # (h_pad, c_pad)
    b2 = p_ref[b2_off:b2_off + 1, 0:c_pad]                # (1, c_pad)

    h = jnp.dot(x, w1, preferred_element_type=jnp.float32) + b1
    h = jnp.maximum(h, 0.0)                               # ReLU (lane-dense)
    y = jnp.dot(h, w2, preferred_element_type=jnp.float32) + b2
    o_ref[...] = y.astype(o_ref.dtype)                    # lane-dense store


def net_forward(x, w1, b1, w2, b2, *, batch_tile=256):
    """x: (B, F) f32; w1: (F, H); b1: (1, H) or (H,); w2: (H, C); b2: (1, C) or (C,)."""
    B, F = x.shape
    H = w1.shape[1]
    C = w2.shape[1]

    f_pad = _round_up(F, LANE)
    h_pad = _round_up(H, LANE)
    c_pad = _round_up(C, LANE)
    width = max(h_pad, c_pad)

    # Batch tile: multiple of 8 sublanes; capped (256 rows of f32 x/o tiles is
    # well inside v7x's 64 MiB VMEM even with double-buffering).
    tb = min(_round_up(B, SUBLANE), _round_up(batch_tile, SUBLANE))
    b_pad = _round_up(B, tb)

    # Zero-pad activations: padded feature lanes / batch rows contribute nothing.
    x_p = jnp.zeros((b_pad, f_pad), jnp.float32).at[:B, :F].set(x)

    # Pack all parameters into a single lane-dense buffer (one DMA).
    n_rows = f_pad + SUBLANE + h_pad + SUBLANE
    packed = jnp.zeros((n_rows, width), jnp.float32)
    packed = packed.at[:F, :H].set(w1)
    packed = packed.at[f_pad, :H].set(jnp.reshape(b1, (-1,)))
    packed = packed.at[f_pad + SUBLANE:f_pad + SUBLANE + H, :C].set(w2)
    packed = packed.at[f_pad + SUBLANE + h_pad, :C].set(jnp.reshape(b2, (-1,)))

    kernel = functools.partial(mlp_kernel, f_pad=f_pad, h_pad=h_pad, c_pad=c_pad)

    out = pl.pallas_call(
        kernel,
        out_shape=jax.ShapeDtypeStruct((b_pad, c_pad), jnp.float32),
        grid=(b_pad // tb,),
        in_specs=[
            # x: tiled over the batch grid axis.
            pl.BlockSpec((tb, f_pad), lambda i: (i, 0)),
            # packed params: same block every iteration -> stays VMEM-resident.
            pl.BlockSpec((n_rows, width), lambda i: (0, 0)),
        ],
        out_specs=pl.BlockSpec((tb, c_pad), lambda i: (i, 0)),
        compiler_params=pltpu.CompilerParams(
            dimension_semantics=("parallel",)),
    )(x_p, packed)

    return out[:B, :C]


def init_params(key, n_features, n_classes, hidden=10):
    """Deterministic synthetic parameters (PyTorch-style uniform fan-in init)."""
    k1, k2, k3, k4 = jax.random.split(key, 4)
    bound1 = 1.0 / jnp.sqrt(n_features)
    bound2 = 1.0 / jnp.sqrt(hidden)
    # Stored already transposed relative to torch.nn.Linear.weight ((out, in)).
    w1 = jax.random.uniform(k1, (n_features, hidden), jnp.float32, -bound1, bound1)
    b1 = jax.random.uniform(k2, (1, hidden), jnp.float32, -bound1, bound1)
    w2 = jax.random.uniform(k3, (hidden, n_classes), jnp.float32, -bound2, bound2)
    b2 = jax.random.uniform(k4, (1, n_classes), jnp.float32, -bound2, bound2)
    return w1, b1, w2, b2


if __name__ == "__main__":
    # Blobs dataset with 5 features, 3 classes (as in the reference script).
    batch, n_features, n_classes = 8, 5, 3

    key = jax.random.PRNGKey(0)
    kx, kp = jax.random.split(key)
    x = jax.random.normal(kx, (batch, n_features), jnp.float32)
    w1, b1, w2, b2 = init_params(kp, n_features, n_classes)

    out = jax.block_until_ready(net_forward(x, w1, b1, w2, b2))

    # Pure-JAX reference for correctness.
    ref = jnp.maximum(x @ w1 + b1, 0.0) @ w2 + b2
    assert out.shape == (batch, n_classes)
    assert jnp.allclose(out, ref, atol=1e-5, rtol=1e-5)

    print("KERNEL_OK")
</pallas_src>

<mosaic_0001>
module attributes {stable_mosaic.version = 11 : i64} {
  func.func @mlp_kernel(%arg0: i32, %arg1: memref<8x128xf32, #tpu.memory_space<vmem>>, %arg2: memref<272x128xf32, #tpu.memory_space<vmem>>, %arg3: memref<8x128xf32, #tpu.memory_space<vmem>>) attributes {dimension_semantics = [#tpu.dimension_semantics<parallel>], iteration_bounds = array<i64: 1>, scalar_prefetch = 0 : i64, scratch_operands = 0 : i64, tpu.core_type = #tpu.core_type<tc>, window_params = [{transform_indices = @transform_0, window_bounds = array<i64: 8, 128>}, {pipeline_mode = #tpu.pipeline_mode<synchronous>, transform_indices = @transform_1, window_bounds = array<i64: 272, 128>}, {transform_indices = @transform_2, window_bounds = array<i64: 8, 128>}]} {
    %c0 = arith.constant 0 : index
    %c0_0 = arith.constant 0 : index
    %0 = vector.load %arg1[%c0, %c0_0] : memref<8x128xf32, #tpu.memory_space<vmem>>, vector<8x128xf32>
    %c0_1 = arith.constant 0 : index
    %c0_2 = arith.constant 0 : index
    %1 = vector.load %arg2[%c0_1, %c0_2] : memref<272x128xf32, #tpu.memory_space<vmem>>, vector<128x128xf32>
    %c128 = arith.constant 128 : index
    %c0_3 = arith.constant 0 : index
    %2 = vector.load %arg2[%c128, %c0_3] : memref<272x128xf32, #tpu.memory_space<vmem>>, vector<1x128xf32>
    %c136 = arith.constant 136 : index
    %c0_4 = arith.constant 0 : index
    %3 = vector.load %arg2[%c136, %c0_4] : memref<272x128xf32, #tpu.memory_space<vmem>>, vector<128x128xf32>
    %c264 = arith.constant 264 : index
    %c0_5 = arith.constant 0 : index
    %4 = vector.load %arg2[%c264, %c0_5] : memref<272x128xf32, #tpu.memory_space<vmem>>, vector<1x128xf32>
    %cst = arith.constant dense<0.000000e+00> : vector<8x128xf32>
    %5 = tpu.matmul %0, %1, %cst {dimension_numbers = #tpu.dot_dimension_numbers<[1], [0], [0], [1], [0, 0, 1, 1], [], []>} : vector<8x128xf32>, vector<128x128xf32>, vector<8x128xf32> -> vector<8x128xf32>
    %6 = vector.broadcast %2 : vector<1x128xf32> to vector<8x128xf32>
    %7 = arith.addf %5, %6 : vector<8x128xf32>
    %cst_6 = arith.constant 0.000000e+00 : f32
    %8 = vector.broadcast %cst_6 : f32 to vector<8x128xf32>
    %9 = arith.maximumf %7, %8 : vector<8x128xf32>
    %cst_7 = arith.constant dense<0.000000e+00> : vector<8x128xf32>
    %10 = tpu.matmul %9, %3, %cst_7 {dimension_numbers = #tpu.dot_dimension_numbers<[1], [0], [0], [1], [0, 0, 1, 1], [], []>} : vector<8x128xf32>, vector<128x128xf32>, vector<8x128xf32> -> vector<8x128xf32>
    %11 = vector.broadcast %4 : vector<1x128xf32> to vector<8x128xf32>
    %12 = arith.addf %10, %11 : vector<8x128xf32>
    %c0_8 = arith.constant 0 : index
    %c0_9 = arith.constant 0 : index
    %13 = vector.load %arg3[%c0_8, %c0_9] : memref<8x128xf32, #tpu.memory_space<vmem>>, vector<8x128xf32>
    tpu.vector_store %arg3[%c0_8, %c0_9], %12 {strides = array<i32>} : memref<8x128xf32, #tpu.memory_space<vmem>>, vector<8x128xf32>,
    return
  }
  func.func @transform_0(%arg0: i32) -> (i32, i32) {
    %c0_i32 = arith.constant 0 : i32
    %c0_i32_0 = arith.constant 0 : i32
    return %arg0, %c0_i32 : i32, i32
  }
  func.func @transform_1(%arg0: i32) -> (i32, i32) {
    %c0_i32 = arith.constant 0 : i32
    %c0_i32_0 = arith.constant 0 : i32
    %c0_i32_1 = arith.constant 0 : i32
    return %c0_i32, %c0_i32_0 : i32, i32
  }
  func.func @transform_2(%arg0: i32) -> (i32, i32) {
    %c0_i32 = arith.constant 0 : i32
    %c0_i32_0 = arith.constant 0 : i32
    return %arg0, %c0_i32 : i32, i32
  }
}

</mosaic_0001>

<bundles_post_ra>
// kernel: tpu_custom_call.1
= control target key start
LH: loop header
LB: loop body
LE: loop exit
PB: predicated region body
PF: predicated region fallthrough
CT: control target
= control target key end

     0   :  { %7 = vsyncpa [#allocation3], 0  ;;  %s555_s0 = inlined_call_operand.hbm [shape: f32[8,128], index: 0, kind: input, shape index: {}]   ;;  %s556_s1 = inlined_call_operand.hbm [shape: f32[272,128], index: 1, kind: input, shape index: {}]   ;;  %s557_s2 = inlined_call_operand.hbm [shape: f32[8,128], index: 2, kind: output, shape index: {}]  }
   0x1   :  { %8 = vsyncpa [#allocation6], 0 }
   0x2   :  { %9 = vsyncpa [#allocation4], 0  ;;  %s473_s9 = smov [#allocation2]   ;;  %s474_s11 = smov [#allocation5]  }
   0x3   :  { %s16_s10 = sshll.u32 %s473_s9, 4  ;;  %s25_s12 = sshll.u32 %s474_s11, 4  ;;  %s17_s10 = int_to_ptr.vmem [resolvable:$true] %s16_s10  ;;  %s496_s12 = int_to_ptr.vmem [resolvable:$true] %s25_s12 }
   0x4   :  { %s401_s15 = scalar_lea.hbm %s555_s0, 128 }
   0x5   :  { %p402_p0 = scmp.ne.s32.totalorder %s555_s0, %s401_s15  ;;  %p405_p1 = scmp.lt.u32.totalorder %s401_s15, %s555_s0 }
   0x7   :  { %p407_p2 = pnand %p405_p1, %p402_p0 }
   0x9   :  { %410 = shalt.err (!%p407_p2)
}
   0xa   :  { %s411_s20 = scalar_lea.vmem %s17_s10, 128  ;;  %p416_p4 = scmp.lt.s32.totalorder %s17_s10, %s17_s10 }
   0xb   :  { %p412_p3 = scmp.ne.s32.totalorder %s17_s10, %s411_s20  ;;  %p417_p5 = scmp.lt.s32.totalorder %s411_s20, %s411_s20 }
   0xd   :  { %p418_p6 = por %p417_p5, %p416_p4 }
   0xf   :  { %p419_p7 = pnand %p418_p6, %p412_p3 }
  0x11   :  { %422 = shalt.err (!%p419_p7)
}
  0x12   :  { %19 = dma.hbm_to_vmem [thread:$0]  %s555_s0, 128, %s17_s10, [#allocation3]  }
  0x13   :  { %s423_s25 = scalar_lea.hbm %s556_s1, 4352 }
  0x14   :  { %p424_p8 = scmp.ne.s32.totalorder %s556_s1, %s423_s25  ;;  %p427_p9 = scmp.lt.u32.totalorder %s423_s25, %s556_s1 }
  0x16   :  { %p429_p10 = pnand %p427_p9, %p424_p8 }
  0x18   :  { %432 = shalt.err (!%p429_p10)
}
  0x19   :  { %s433_s30 = scalar_lea.vmem %s496_s12, 4352  ;;  %p438_p12 = scmp.lt.s32.totalorder %s496_s12, %s496_s12 }
  0x1a   :  { %p434_p11 = scmp.ne.s32.totalorder %s496_s12, %s433_s30  ;;  %p439_p13 = scmp.lt.s32.totalorder %s433_s30, %s433_s30 }
  0x1c   :  { %p440_p0 = por %p439_p13, %p438_p12 }
  0x1e   :  { %p441_p1 = pnand %p440_p0, %p434_p11 }
  0x20   :  { %444 = shalt.err (!%p441_p1)
}
  0x21   :  { %s475_s0 = smov 128   ;;  %s476_s3 = smov 8  }
  0x22   :  { %31 = dma.hbm_to_vmem [thread:$0]  %s556_s1, 4352, %s496_s12, [#allocation6], %s475_s0, %s475_s0, %s476_s3  }
  0x23   :  { %467 = dma.done.wait [#allocation3], 128  }
  0x24   :  { %468 = vsyncadd [#allocation3], 4294967168 }
  0x25   :  { %469 = dma.done.wait [#allocation6], 4352  }
  0x26   :  { %470 = vsyncadd [#allocation6], 4294962944  ;;  %v477_v0 = vmov 0.0|0.0   ;;  %vm478_vm0 = vmmov 0   ;;  %v479_v1 = vmov 0.0   ;;  %v39_v2 = vld [vmem:[#allocation5] sm:$0xff] }
  0x27   :  { %345 = vmatprep.subr.bf16.mxu0 %v477_v0  ;;  %307 = vmatprep.mubr.msk.f32.mxu0 %vm478_vm0, %v479_v1  ;;  %v40_v3 = vld [vmem:[#allocation5 + $0x8] sm:$0xff]  ;;  %v41_v4 = vld [vmem:[#allocation5 + $0x10] sm:$0xff]  ;;  %v42_v6 = vld [vmem:[#allocation5 + $0x18] sm:$0xff]  ;;  %s480_s1 = smov [#allocation7]  }
  0x28   :  { %369 = vmatprep.subr.bf16.mxu1 %v477_v0  ;;  %342 = vmatprep.mubr.msk.f32.mxu1 %vm478_vm0, %v479_v1  ;;  %v346_v5 = vpack.c.bf16 %v40_v3, %v39_v2  ;;  %v349_v7 = vpack.c.bf16 %v42_v6, %v41_v4  ;;  %v43_v8 = vld [vmem:[#allocation5 + $0x20] sm:$0xff]  ;;  %v44_v9 = vld [vmem:[#allocation5 + $0x28] sm:$0xff]  ;;  %v57_v11 = vld [vmem:[#allocation5 + $0x90] sm:$0xff]  ;;  %s229_s6 = sshll.u32 %s480_s1, 4  ;;  %s230_s6 = int_to_ptr.vmem [resolvable:$true] %s229_s6 }
  0x29   :  { %v56_v10 = vld [vmem:[#allocation5 + $0x88] sm:$0xff]  ;;  %v58_v12 = vld [vmem:[#allocation5 + $0x98] sm:$0xff]  ;;  %v59_v13 = vld [vmem:[#allocation5 + $0xa0] sm:$0xff]  ;;  %v352_v14 = vpack.c.bf16 %v44_v9, %v43_v8  ;;  %s445_s7 = scalar_lea.vmem %s230_s6, 128  ;;  %p450_p3 = scmp.lt.s32.totalorder %s230_s6, %s230_s6 }
  0x2a   :  { %347 = vmatpush3.bf16.msra.mxu0 %v346_v5  ;;  %v370_v15 = vpack.c.bf16 %v57_v11, %v56_v10  ;;  %v45_v16 = vld [vmem:[#allocation5 + $0x30] sm:$0xff]  ;;  %v46_v17 = vld [vmem:[#allocation5 + $0x38] sm:$0xff]  ;;  %v373_v18 = vpack.c.bf16 %v59_v13, %v58_v12  ;;  %v60_v19 = vld [vmem:[#allocation5 + $0xa8] sm:$0xff]  ;;  %p446_p2 = scmp.ne.s32.totalorder %s230_s6, %s445_s7  ;;  %p451_p4 = scmp.lt.s32.totalorder %s445_s7, %s445_s7 }
  0x2b   :  { %348 = vmatprep.subr.bf16.mxu0 %v477_v0  ;;  %v61_v20 = vld [vmem:[#allocation5 + $0xb0] sm:$0xff]  ;;  %v355_v21 = vpack.c.bf16 %v46_v17, %v45_v16  ;;  %v47_v22 = vld [vmem:[#allocation5 + $0x40] sm:$0xff]  ;;  %v48_v23 = vld [vmem:[#allocation5 + $0x48] sm:$0xff] }
  0x2c   :  { %371 = vmatpush3.bf16.msra.mxu1 %v370_v15  ;;  %v376_v24 = vpack.c.bf16 %v61_v20, %v60_v19  ;;  %v62_v25 = vld [vmem:[#allocation5 + $0xb8] sm:$0xff]  ;;  %v63_v26 = vld [vmem:[#allocation5 + $0xc0] sm:$0xff]  ;;  %v358_v27 = vpack.c.bf16 %v48_v23, %v47_v22  ;;  %v49_v28 = vld [vmem:[#allocation5 + $0x50] sm:$0xff]  ;;  %p452_p5 = por %p451_p4, %p450_p3 }
  0x2d   :  { %372 = vmatprep.subr.bf16.mxu1 %v477_v0  ;;  %v50_v29 = vld [vmem:[#allocation5 + $0x58] sm:$0xff]  ;;  %v379_v30 = vpack.c.bf16 %v63_v26, %v62_v25  ;;  %v64_v31 = vld [vmem:[#allocation5 + $0xc8] sm:$0xff]  ;;  %v65_v32 = vld [vmem:[#allocation5 + $0xd0] sm:$0xff] }
  0x2e   :  { %350 = vmatpush3.bf16.msra.mxu0 %v349_v7  ;;  %v361_v33 = vpack.c.bf16 %v50_v29, %v49_v28  ;;  %v51_v34 = vld [vmem:[#allocation5 + $0x60] sm:$0xff]  ;;  %v52_v35 = vld [vmem:[#allocation5 + $0x68] sm:$0xff]  ;;  %v382_v36 = vpack.c.bf16 %v65_v32, %v64_v31  ;;  %v66_v37 = vld [vmem:[#allocation5 + $0xd8] sm:$0xff]  ;;  %p453_p6 = pnand %p452_p5, %p446_p2 }
  0x2f   :  { %351 = vmatprep.subr.bf16.mxu0 %v477_v0  ;;  %v67_v38 = vld [vmem:[#allocation5 + $0xe0] sm:$0xff]  ;;  %v364_v39 = vpack.c.bf16 %v52_v35, %v51_v34  ;;  %v53_v40 = vld [vmem:[#allocation5 + $0x70] sm:$0xff]  ;;  %v54_v41 = vld [vmem:[#allocation5 + $0x78] sm:$0xff] }
  0x30   :  { %374 = vmatpush3.bf16.msra.mxu1 %v373_v18  ;;  %v385_v42 = vpack.c.bf16 %v67_v38, %v66_v37  ;;  %v68_v43 = vld [vmem:[#allocation5 + $0xe8] sm:$0xff]  ;;  %v69_v44 = vld [vmem:[#allocation5 + $0xf0] sm:$0xff]  ;;  %v367_v45 = vpack.c.bf16 %v54_v41, %v53_v40  ;;  %v38_v47 = vld [vmem:[#allocation2] sm:$0xff] }
  0x31   :  { %375 = vmatprep.subr.bf16.mxu1 %v477_v0  ;;  %v388_v46 = vpack.c.bf16 %v69_v44, %v68_v43  ;;  %v70_v48 = vld [vmem:[#allocation5 + $0xf8] sm:$0xff]  ;;  %v71_v49 = vld [vmem:[#allocation5 + $0x100] sm:$0xff]  ;;  %v240_v56 = vld [vmem:[#allocation5 + $0x108] ss:$0 sm:$0xff] }
  0x32   :  { %353 = vmatpush3.bf16.msra.mxu0 %v352_v14  ;;  %v391_v50 = vpack.c.bf16 %v71_v49, %v70_v48  ;;  %v239_v51 = vld [vmem:[#allocation5 + $0x80] ss:$0 sm:$0xff] }
  0x33   :  { %354 = vmatprep.subr.bf16.mxu0 %v477_v0 }
  0x34   :  { %377 = vmatpush3.bf16.msra.mxu1 %v376_v24 }
  0x35   :  { %378 = vmatprep.subr.bf16.mxu1 %v477_v0 }
  0x36   :  { %356 = vmatpush3.bf16.msra.mxu0 %v355_v21 }
  0x37   :  { %357 = vmatprep.subr.bf16.mxu0 %v477_v0 }
  0x38   :  { %380 = vmatpush3.bf16.msra.mxu1 %v379_v30 }
  0x39   :  { %381 = vmatprep.subr.bf16.mxu1 %v477_v0 }
  0x3a   :  { %359 = vmatpush3.bf16.msra.mxu0 %v358_v27 }
  0x3b   :  { %360 = vmatprep.subr.bf16.mxu0 %v477_v0 }
  0x3c   :  { %383 = vmatpush3.bf16.msra.mxu1 %v382_v36 }
  0x3d   :  { %384 = vmatprep.subr.bf16.mxu1 %v477_v0 }
  0x3e   :  { %362 = vmatpush3.bf16.msra.mxu0 %v361_v33 }
  0x3f   :  { %363 = vmatprep.subr.bf16.mxu0 %v477_v0 }
  0x40   :  { %386 = vmatpush3.bf16.msra.mxu1 %v385_v42 }
  0x41   :  { %387 = vmatprep.subr.bf16.mxu1 %v477_v0 }
  0x42   :  { %365 = vmatpush3.bf16.msra.mxu0 %v364_v39 }
  0x43   :  { %366 = vmatprep.subr.bf16.mxu0 %v477_v0 }
  0x44   :  { %389 = vmatpush3.bf16.msra.mxu1 %v388_v46 }
  0x45   :  { %390 = vmatprep.subr.bf16.mxu1 %v477_v0 }
  0x46   :  { %368 = vmatpush3.bf16.msra.mxu0 %v367_v45 }
  0x48   :  { %392 = vmatpush3.bf16.msra.mxu1 %v391_v50 }
  0x49   :  { %308 = vmatmul.mubr.f32.vlgmr.msra.gmra.mrb[0].mxu0 %v38_v47 }
 0x11c   :  { %v143_v52 = vpop.f32.mrb[0].mxu0 }
 0x11d   :  { %v144_v53 = vadd.f32 %v239_v51, %v143_v52  ;;  %v309_v54 = vpop.f32.mrb[1].mxu0 }
 0x11f   :  { %v147_v55 = vmax.f32 %v144_v53, 0.0 }
 0x121   :  { %343 = vmatmul.mubr.f32.vlgmr.msra.gmra.mrb[0].mxu1 %v147_v55 }
 0x1f4   :  { %v218_v57 = vpop.f32.mrb[0].mxu1 }
 0x1f5   :  { %v219_v58 = vadd.f32 %v240_v56, %v218_v57  ;;  %v344_v59 = vpop.f32.mrb[1].mxu1 }
 0x1f7   :  { %222 = vst [vmem:[#allocation7] sm:$0xff] %v219_v58 }
 0x1f8   :  { %456 = shalt.err (!%p453_p6)
}
 0x1f9   :  { %s457_s10 = scalar_lea.hbm %s557_s2, 128 }
 0x1fa   :  { %p458_p7 = scmp.ne.s32.totalorder %s557_s2, %s457_s10  ;;  %p461_p8 = scmp.lt.u32.totalorder %s457_s10, %s557_s2 }
 0x1fc   :  { %p463_p9 = pnand %p461_p8, %p458_p7 }
 0x1fe   :  { %466 = shalt.err (!%p463_p9)
}
 0x1ff   :  { %232 = dma.vmem_to_hbm [thread:$0]  %s230_s6, 128, %s557_s2, [#allocation4]  }
 0x200   :  { %471 = dma.done.wait [#allocation4], 128  }
 0x201   :  { %472 = vsyncadd [#allocation4], 4294967168 }
 0x202   :  { %236 = vsyncpa [#allocation3], 1 }
 0x203   :  { %237 = vsyncpa [#allocation6], 1 }
 0x204   :  { %238 = vsyncpa [#allocation4], 1 }

</bundles_post_ra>
